<compile_context>
chip_gen: v7x
topology: tpu7x:2x2x1
jax: 0.10.0
libtpu: 0.0.40
codegen_flags: <defaults>
</compile_context>

<pallas_src>
import functools

import jax
import jax.numpy as jnp
from jax import lax
from jax.experimental import pallas as pl
from jax.experimental.pallas import tpu as pltpu


# ----------------------------------------------------------------------------
# Planning helpers.
# ----------------------------------------------------------------------------
_LANE = 128


def _round_up(a, m):
    return ((a + m - 1) // m) * m


def _cdiv(a, b):
    return (a + b - 1) // b


def _tpu_vmem_capacity_bytes():
    """Physical VMEM of the current generation (conservative fallback: v7x)."""
    try:
        cap = getattr(pltpu.get_tpu_info(), "vmem_capacity_bytes", None)
        if cap:
            return int(cap)
    except Exception:
        pass
    return 64 << 20


def _plan_k_tiles(K, stream_bytes_per_k, resident_bytes):
    """Pick the K tile size from the per-generation VMEM budget.

    stream_bytes_per_k: bytes of streamed (double-buffered) data per K column.
    resident_bytes:     VMEM held by blocks whose index never changes
                        (assumed double-buffered by the pipeline).
    Returns (tk, n_steps, rem, vmem_limit_bytes).  rem == 0 means the last
    tile is full; otherwise only its first `rem` lanes are valid and must be
    masked before feeding the MXU.
    """
    cap = _tpu_vmem_capacity_bytes()
    hard_cap = min((cap * 3) // 4, 100 << 20)   # 48 MiB on v7x, ~96-100 MiB else
    headroom = 2 << 20
    stream_budget = max(hard_cap - resident_bytes - headroom, 4 << 20)
    per_buffer = stream_budget // 2             # default double buffering

    tk = max(_LANE, (per_buffer // max(stream_bytes_per_k, 1)) // _LANE * _LANE)
    if tk >= K:
        tk = K                                  # single block == full K dim
    else:
        steps = _cdiv(K, tk)                    # rebalance so tail isn't tiny
        tk = min(tk, _round_up(_cdiv(K, steps), _LANE))
    steps = _cdiv(K, tk)
    rem = K % tk

    need = 2 * tk * stream_bytes_per_k + resident_bytes + headroom
    vmem_limit = int(min(max(need, 32 << 20), hard_cap))
    return tk, steps, rem, vmem_limit


def _features(x_nchw):
    """NCHW -> (N, K) feature view in a stream-friendly dtype (f32/bf16)."""
    B, C, H, W = x_nchw.shape
    N, K = B * C, H * W
    if x_nchw.dtype not in (jnp.float32, jnp.bfloat16):
        x_nchw = x_nchw.astype(jnp.float32)
    return x_nchw.reshape(N, K), N, K


def _masked_tile(f_ref, rem):
    """Load the current K tile; zero the unspecified OOB lanes of the last one."""
    f = f_ref[...]
    if rem:   # static: only emitted when K % tk != 0
        k = pl.program_id(0)
        last = pl.num_programs(0) - 1
        lane = lax.broadcasted_iota(jnp.int32, f.shape, 1)
        valid = jnp.logical_or(k != last, lane < rem)
        f = jnp.where(valid, f, jnp.zeros_like(f))
    return f


def _gram_dot(f):
    # F @ F.T without materializing the transpose: contract last dim of both.
    return lax.dot_general(f, f,
                           dimension_numbers=(((1,), (1,)), ((), ())),
                           preferred_element_type=jnp.float32)


# ----------------------------------------------------------------------------
# Kernel 1: gram matrix  G = (F @ F.T) / denom,  F is (N, K), K streamed.
# Output block is resident across the reduction axis -> accumulate in place.
# ----------------------------------------------------------------------------
def _gram_kernel(f_ref, g_ref, *, rem, inv_denom):
    k = pl.program_id(0)

    @pl.when(k == 0)
    def _():
        g_ref[...] = jnp.zeros_like(g_ref)

    g_ref[...] += _gram_dot(_masked_tile(f_ref, rem))

    @pl.when(k == pl.num_programs(0) - 1)
    def _():
        g_ref[...] *= inv_denom


def gram_matrix_pallas(x_nchw):
    """Pallas equivalent of torch `gram_matrix` (returns (B*C, B*C) f32)."""
    feats, N, K = _features(x_nchw)
    itemsize = feats.dtype.itemsize
    resident = 2 * N * N * 4                    # gram output block
    tk, steps, rem, vmem_limit = _plan_k_tiles(K, N * itemsize, resident)

    return pl.pallas_call(
        functools.partial(_gram_kernel, rem=rem, inv_denom=1.0 / float(N * K)),
        out_shape=jax.ShapeDtypeStruct((N, N), jnp.float32),
        grid_spec=pltpu.PrefetchScalarGridSpec(
            num_scalar_prefetch=0,
            grid=(steps,),
            in_specs=[pl.BlockSpec((N, tk), lambda k: (0, k))],
            out_specs=pl.BlockSpec((N, N), lambda k: (0, 0)),
        ),
        compiler_params=pltpu.CompilerParams(
            dimension_semantics=("arbitrary",),
            vmem_limit_bytes=vmem_limit),
        cost_estimate=pl.CostEstimate(
            flops=int(2 * N * N * K),
            bytes_accessed=int(N * K * itemsize + N * N * 4),
            transcendentals=0),
    )(feats)


# ----------------------------------------------------------------------------
# Kernel 2: fused gram + MSE-vs-target + beta scale (the StyleLoss forward).
# Also emits the scaled gram so the backward never re-streams the features.
# ----------------------------------------------------------------------------
def _style_loss_kernel(f_ref, t_ref, loss_ref, gram_ref, *,
                       rem, inv_denom, inv_nn, beta):
    k = pl.program_id(0)

    @pl.when(k == 0)
    def _():
        gram_ref[...] = jnp.zeros_like(gram_ref)

    gram_ref[...] += _gram_dot(_masked_tile(f_ref, rem))

    @pl.when(k == pl.num_programs(0) - 1)
    def _():
        g = gram_ref[...] * inv_denom
        gram_ref[...] = g
        diff = g - t_ref[...]
        loss_ref[0, 0] = (beta * inv_nn) * jnp.sum(diff * diff)


def _style_loss_forward(x_nchw, target_gram, beta):
    feats, N, K = _features(x_nchw)
    itemsize = feats.dtype.itemsize
    tgt = target_gram.astype(jnp.float32)
    resident = 4 * N * N * 4                    # target + gram output blocks
    tk, steps, rem, vmem_limit = _plan_k_tiles(K, N * itemsize, resident)

    # TODO(synk): for very large N=B*C (>~512) add a leading "parallel" grid
    # axis tiling the gram rows so v7x's two TensorCores split the MXU work.
    loss, gram = pl.pallas_call(
        functools.partial(_style_loss_kernel, rem=rem,
                          inv_denom=1.0 / float(N * K),
                          inv_nn=1.0 / float(N * N),
                          beta=float(beta)),
        out_shape=(jax.ShapeDtypeStruct((1, 1), jnp.float32),
                   jax.ShapeDtypeStruct((N, N), jnp.float32)),
        grid_spec=pltpu.PrefetchScalarGridSpec(
            num_scalar_prefetch=0,
            grid=(steps,),
            in_specs=[
                pl.BlockSpec((N, tk), lambda k: (0, k)),   # streamed features
                pl.BlockSpec((N, N), lambda k: (0, 0)),    # target (resident)
            ],
            out_specs=(
                pl.BlockSpec((1, 1), lambda k: (0, 0),
                             memory_space=pltpu.SMEM),      # scalar loss
                pl.BlockSpec((N, N), lambda k: (0, 0)),     # scaled gram
            ),
        ),
        compiler_params=pltpu.CompilerParams(
            dimension_semantics=("arbitrary",),
            vmem_limit_bytes=vmem_limit),
        cost_estimate=pl.CostEstimate(
            flops=int(2 * N * N * K + 3 * N * N),
            bytes_accessed=int(N * K * itemsize + 2 * N * N * 4 + 4),
            transcendentals=0),
    )(feats, tgt)
    return loss[0, 0], gram


# ----------------------------------------------------------------------------
# Kernel 3 (backward): grad_F = D @ F with D = scaled (G - T), F K-streamed.
# The OOB lanes of the final F tile only produce OOB output columns, which
# Pallas clips on writeback, so no mask is required here.
# ----------------------------------------------------------------------------
def _grad_feats_kernel(d_ref, f_ref, o_ref):
    f = f_ref[...]
    if f.dtype != jnp.float32:
        f = f.astype(jnp.float32)
    o_ref[...] = jnp.dot(d_ref[...], f,
                         preferred_element_type=jnp.float32).astype(o_ref.dtype)


def _grad_feats_pallas(diff_scaled, feats, out_dtype):
    N, K = feats.shape
    in_item = feats.dtype.itemsize
    out_item = jnp.dtype(out_dtype).itemsize
    resident = 2 * N * N * 4                     # resident diff block
    tk, steps, _, vmem_limit = _plan_k_tiles(K, N * (in_item + out_item),
                                             resident)
    return pl.pallas_call(
        _grad_feats_kernel,
        out_shape=jax.ShapeDtypeStruct((N, K), out_dtype),
        grid_spec=pltpu.PrefetchScalarGridSpec(
            num_scalar_prefetch=0,
            grid=(steps,),
            in_specs=[pl.BlockSpec((N, N), lambda k: (0, 0)),
                      pl.BlockSpec((N, tk), lambda k: (0, k))],
            out_specs=pl.BlockSpec((N, tk), lambda k: (0, k)),
        ),
        compiler_params=pltpu.CompilerParams(
            dimension_semantics=("parallel",),
            vmem_limit_bytes=vmem_limit),
        cost_estimate=pl.CostEstimate(
            flops=int(2 * N * N * K),
            bytes_accessed=int(N * K * (in_item + out_item) + N * N * 4),
            transcendentals=0),
    )(diff_scaled, feats)


# ----------------------------------------------------------------------------
# custom_vjp so the loss is differentiable w.r.t. the image (style transfer).
#   dL/dF = (4*beta / (N^2 * denom)) * (G - T) @ F        (G, T symmetric)
#   dL/dT = (-2*beta / N^2) * (G - T)
# ----------------------------------------------------------------------------
@functools.partial(jax.custom_vjp, nondiff_argnums=(2,))
def style_loss_pallas(x, target_gram, beta):
    loss, _ = _style_loss_forward(x, target_gram, beta)
    return loss


def _style_loss_fwd_rule(x, target_gram, beta):
    loss, gram = _style_loss_forward(x, target_gram, beta)
    return loss, (x, gram, target_gram)


def _style_loss_bwd_rule(beta, residuals, ct):
    x, gram, target_gram = residuals
    B, C, H, W = x.shape
    N, K = B * C, H * W
    feats, _, _ = _features(x)                     # native dtype, no upcast copy
    diff = gram - target_gram.astype(jnp.float32)  # gram reused from forward
    coef = 4.0 * float(beta) / (float(N * N) * float(N * K))
    grad_flat = _grad_feats_pallas((ct * coef) * diff, feats, x.dtype)
    grad_x = grad_flat.reshape(x.shape)
    grad_t = (ct * (-2.0 * float(beta) / float(N * N))) * diff
    return grad_x, grad_t.astype(target_gram.dtype)


style_loss_pallas.defvjp(_style_loss_fwd_rule, _style_loss_bwd_rule)


# ----------------------------------------------------------------------------
# StyleLoss module analogue.
# ----------------------------------------------------------------------------
class StyleLoss:
    def __init__(self, target_feature, beta):
        # target gram computed once at init (constant, i.e. "detached").
        self.target = gram_matrix_pallas(target_feature)
        self.beta = float(beta)
        self.loss = None

    def __call__(self, x):
        self.loss = style_loss_pallas(x, self.target, self.beta)
        return x  # forward returns the input unchanged (pass-through layer)


# ----------------------------------------------------------------------------
# Reference (pure JAX) for verification.
# ----------------------------------------------------------------------------
def _gram_ref(x):
    B, C, H, W = x.shape
    f = x.reshape(B * C, H * W)
    return (f @ f.T) / (B * C * H * W)


def _style_loss_ref(x, target, beta):
    g = _gram_ref(x)
    return beta * jnp.mean((g - target) ** 2)


if __name__ == "__main__":
    key = jax.random.PRNGKey(0)
    k_t, k_x = jax.random.split(key)

    B, C, H, W = 2, 4, 16, 16
    target_feature = jax.random.normal(k_t, (B, C, H, W), dtype=jnp.float32)
    x = jax.random.normal(k_x, (B, C, H, W), dtype=jnp.float32)
    beta = 0.5

    module = StyleLoss(target_feature, beta)
    out = module(x)
    loss = module.loss
    jax.block_until_ready((out, loss))

    # sanity check vs pure-JAX reference (forward)
    ref_target = _gram_ref(target_feature)
    ref_loss = _style_loss_ref(x, ref_target, beta)
    assert jnp.allclose(module.target, ref_target, rtol=1e-5, atol=1e-6)
    assert jnp.allclose(loss, ref_loss, rtol=1e-5, atol=1e-6)
    assert jnp.allclose(out, x)

    # gradient check (custom_vjp path for style-transfer optimization)
    g_pallas = jax.grad(lambda xx: style_loss_pallas(xx, module.target, beta))(x)
    g_ref = jax.grad(lambda xx: _style_loss_ref(xx, ref_target, beta))(x)
    jax.block_until_ready((g_pallas, g_ref))
    scale = float(jnp.max(jnp.abs(g_ref))) + 1e-12
    assert jnp.allclose(g_pallas, g_ref, rtol=2e-3, atol=2e-3 * scale)

    print("KERNEL_OK")
</pallas_src>

<mosaic_0001>
module attributes {stable_mosaic.version = 11 : i64} {
  func.func @_gram_kernel(%arg0: i32, %arg1: memref<8x256xf32, #tpu.memory_space<vmem>>, %arg2: memref<8x8xf32, #tpu.memory_space<vmem>>) attributes {dimension_semantics = [#tpu.dimension_semantics<arbitrary>], iteration_bounds = array<i64: 1>, scalar_prefetch = 0 : i64, scratch_operands = 0 : i64, tpu.core_type = #tpu.core_type<tc>, window_params = [{transform_indices = @transform_0, window_bounds = array<i64: 8, 256>}, {pipeline_mode = #tpu.pipeline_mode<synchronous>, transform_indices = @transform_1, window_bounds = array<i64: 8, 8>}]} {
    %c0_i32 = arith.constant 0 : i32
    %0 = arith.cmpi eq, %arg0, %c0_i32 : i32
    %1 = arith.extui %0 : i1 to i32
    %c0_i32_0 = arith.constant 0 : i32
    %2 = arith.cmpi ne, %1, %c0_i32_0 : i32
    scf.if %2 {
      %cst_8 = arith.constant 0.000000e+00 : f32
      %11 = vector.broadcast %cst_8 : f32 to vector<8x8xf32>
      %c0_9 = arith.constant 0 : index
      %c0_10 = arith.constant 0 : index
      %12 = vector.load %arg2[%c0_9, %c0_10] : memref<8x8xf32, #tpu.memory_space<vmem>>, vector<8x8xf32>
      tpu.vector_store %arg2[%c0_9, %c0_10], %11 {strides = array<i32>} : memref<8x8xf32, #tpu.memory_space<vmem>>, vector<8x8xf32>,
    } else {
    }
    %c0 = arith.constant 0 : index
    %c0_1 = arith.constant 0 : index
    %3 = vector.load %arg2[%c0, %c0_1] : memref<8x8xf32, #tpu.memory_space<vmem>>, vector<8x8xf32>
    %c0_2 = arith.constant 0 : index
    %c0_3 = arith.constant 0 : index
    %4 = vector.load %arg1[%c0_2, %c0_3] : memref<8x256xf32, #tpu.memory_space<vmem>>, vector<8x256xf32>
    %cst = arith.constant dense<0.000000e+00> : vector<8x8xf32>
    %5 = tpu.matmul %4, %4, %cst {dimension_numbers = #tpu.dot_dimension_numbers<[1], [1], [0], [0], [0, 0, 1, 0], [], []>} : vector<8x256xf32>, vector<8x256xf32>, vector<8x8xf32> -> vector<8x8xf32>
    %6 = arith.addf %3, %5 : vector<8x8xf32>
    %c0_4 = arith.constant 0 : index
    %c0_5 = arith.constant 0 : index
    %7 = vector.load %arg2[%c0_4, %c0_5] : memref<8x8xf32, #tpu.memory_space<vmem>>, vector<8x8xf32>
    tpu.vector_store %arg2[%c0_4, %c0_5], %6 {strides = array<i32>} : memref<8x8xf32, #tpu.memory_space<vmem>>, vector<8x8xf32>,
    %c0_i32_6 = arith.constant 0 : i32
    %8 = arith.cmpi eq, %arg0, %c0_i32_6 : i32
    %9 = arith.extui %8 : i1 to i32
    %c0_i32_7 = arith.constant 0 : i32
    %10 = arith.cmpi ne, %9, %c0_i32_7 : i32
    scf.if %10 {
      %c0_8 = arith.constant 0 : index
      %c0_9 = arith.constant 0 : index
      %11 = vector.load %arg2[%c0_8, %c0_9] : memref<8x8xf32, #tpu.memory_space<vmem>>, vector<8x8xf32>
      %cst_10 = arith.constant 4.8828125E-4 : f32
      %12 = vector.broadcast %cst_10 : f32 to vector<8x8xf32>
      %13 = arith.mulf %11, %12 : vector<8x8xf32>
      %c0_11 = arith.constant 0 : index
      %c0_12 = arith.constant 0 : index
      %14 = vector.load %arg2[%c0_11, %c0_12] : memref<8x8xf32, #tpu.memory_space<vmem>>, vector<8x8xf32>
      tpu.vector_store %arg2[%c0_11, %c0_12], %13 {strides = array<i32>} : memref<8x8xf32, #tpu.memory_space<vmem>>, vector<8x8xf32>,
    } else {
    }
    return
  }
  func.func @transform_0(%arg0: i32) -> (i32, i32) {
    %c0_i32 = arith.constant 0 : i32
    %c0_i32_0 = arith.constant 0 : i32
    return %c0_i32, %arg0 : i32, i32
  }
  func.func @transform_1(%arg0: i32) -> (i32, i32) {
    %c0_i32 = arith.constant 0 : i32
    %c0_i32_0 = arith.constant 0 : i32
    %c0_i32_1 = arith.constant 0 : i32
    return %c0_i32, %c0_i32_0 : i32, i32
  }
}

</mosaic_0001>

<bundles_post_ra>
// kernel: tpu_custom_call.1
= control target key start
LH: loop header
LB: loop body
LE: loop exit
PB: predicated region body
PF: predicated region fallthrough
CT: control target
= control target key end

     0   :  { %6 = vsyncpa [#allocation3], 0  ;;  %s215_s0 = inlined_call_operand.hbm [shape: f32[8,256], index: 0, kind: input, shape index: {}]   ;;  %s216_s1 = inlined_call_operand.hbm [shape: f32[8,8], index: 1, kind: output, shape index: {}]  }
   0x1   :  { %7 = vsyncpa [#allocation4], 0  ;;  %s175_s6 = smov [#allocation2]   ;;  %s127_s10 = scalar_lea.hbm %s215_s0, 256 }
   0x2   :  { %s14_s7 = sshll.u32 %s175_s6, 4  ;;  %p128_p0 = scmp.ne.s32.totalorder %s215_s0, %s127_s10  ;;  %s15_s7 = int_to_ptr.vmem [resolvable:$true] %s14_s7 }
   0x3   :  { %p131_p1 = scmp.lt.u32.totalorder %s127_s10, %s215_s0 }
   0x5   :  { %p133_p2 = pnand %p131_p1, %p128_p0 }
   0x7   :  { %136 = shalt.err (!%p133_p2)
}
   0x8   :  { %s137_s15 = scalar_lea.vmem %s15_s7, 256  ;;  %p142_p4 = scmp.lt.s32.totalorder %s15_s7, %s15_s7 }
   0x9   :  { %p138_p3 = scmp.ne.s32.totalorder %s15_s7, %s137_s15  ;;  %p143_p5 = scmp.lt.s32.totalorder %s137_s15, %s137_s15 }
   0xb   :  { %p144_p6 = por %p143_p5, %p142_p4 }
   0xd   :  { %p145_p7 = pnand %p144_p6, %p138_p3 }
   0xf   :  { %148 = shalt.err (!%p145_p7)
}
  0x10   :  { %17 = dma.hbm_to_vmem [thread:$0]  %s215_s0, 256, %s15_s7, [#allocation3]  }
  0x11   :  { %171 = dma.done.wait [#allocation3], 256  }
  0x12   :  { %172 = vsyncadd [#allocation3], 4294967040  ;;  %vm25_vm0 = vcmask 64512   ;;  %v176_v0 = vmov 0.0   ;;  %v29_v1 = vld [vmem:[#allocation2 + $0x8] sm:$0xff]  ;;  %v28_v2 = vld [vmem:[#allocation2] sm:$0xff] }
  0x13   :  { %26 = vst.msk [vmem:[#allocation5] sm:$0xff] %vm25_vm0, %v176_v0  ;;  %30 = vmatprep.subr.mxu0 %v29_v1  ;;  %94 = vmatprep.mubr.f32.mxu0 %v29_v1  ;;  %s177_s18 = smov [#allocation5]  }
  0x14   :  { %31 = vmatpush1.xpose.msra.mxu0 %v28_v2  ;;  %s115_s0 = sshll.u32 %s177_s18, 4  ;;  %s116_s0 = int_to_ptr.vmem [resolvable:$true] %s115_s0 }
  0x15   :  { %s149_s19 = scalar_lea.vmem %s116_s0, 128  ;;  %p154_p9 = scmp.lt.s32.totalorder %s116_s0, %s116_s0 }
  0x16   :  { %p150_p8 = scmp.ne.s32.totalorder %s116_s0, %s149_s19  ;;  %p155_p10 = scmp.lt.s32.totalorder %s149_s19, %s149_s19 }
  0x17   :  { %95 = vmatmul.mubr.f32.vlgmr.msra.gmra.mrb[0].mxu0 %v28_v2 }
  0x18   :  { %p156_p11 = por %p155_p10, %p154_p9 }
  0x1a   :  { %v27_v3 = vld [vmem:[#allocation5] sm:$0xff]  ;;  %p157_p12 = pnand %p156_p11, %p150_p8 }
  0xea   :  { %v96_v4 = vpop.f32.mrb[0].mxu0 }
  0xeb   :  { %v100_v5 = vadd.f32 %v96_v4, %v27_v3  ;;  %v98_v6 = vpop.f32.mrb[1].mxu0 }
  0xed   :  { %102 = vst.msk [vmem:[#allocation5] sm:$0xff] %vm25_vm0, %v100_v5 }
  0xf4   :  { %v106_v7 = vld [vmem:[#allocation5] sm:$0xff] }
  0xf5   :  { %v107_v8 = vmul.f32 0.00048828125, %v106_v7 }
  0xf7   :  { %108 = vst.msk [vmem:[#allocation5] sm:$0xff] %vm25_vm0, %v107_v8 }
  0xf8   :  { %160 = shalt.err (!%p157_p12)
}
  0xf9   :  { %s161_s22 = scalar_lea.hbm %s216_s1, 128 }
  0xfa   :  { %p162_p13 = scmp.ne.s32.totalorder %s216_s1, %s161_s22  ;;  %p165_p0 = scmp.lt.u32.totalorder %s161_s22, %s216_s1 }
  0xfc   :  { %p167_p1 = pnand %p165_p0, %p162_p13 }
  0xfe   :  { %170 = shalt.err (!%p167_p1)
}
  0xff   :  { %118 = dma.vmem_to_hbm [thread:$0]  %s116_s0, 128, %s216_s1, [#allocation4]  }
 0x100   :  { %173 = dma.done.wait [#allocation4], 128  }
 0x101   :  { %174 = vsyncadd [#allocation4], 4294967168 }
 0x102   :  { %122 = vsyncpa [#allocation3], 1 }
 0x103   :  { %123 = vsyncpa [#allocation4], 1 }

</bundles_post_ra>
